<compile_context>
chip_gen: v5e
topology: v5e:2x2
jax: 0.10.0
libtpu: 0.0.40
codegen_flags: <defaults>
</compile_context>

<pallas_src>
import numpy as np
import jax
import jax.numpy as jnp
from jax.experimental import pallas as pl
from jax.experimental.pallas import tpu as pltpu

K = 3          # ConvTranspose1d kernel size
LEAK = 0.7     # factor used for negative values in torch.where
LANES = 128    # lane width of one vreg (working-slab width)
SUBLANES = 8   # sublane padding of the in-kernel scratch slab


def _make_kernel(rows, l0, l1, l2):
    """Build the kernel with static row count / conv lengths baked in."""

    def kernel(x_ref, p_ref, o_ref, slab_ref):
        # x_ref:    (rows, l0)    f32 VMEM — natural-shape input
        # p_ref:    (8,)          f32 SMEM — [w0_0,w0_1,w0_2,b0, w1_0,w1_1+1,w1_2,b1]
        # o_ref:    (rows, l2)    f32 VMEM — natural-shape output
        # slab_ref: (r_pad, 128)  f32 VMEM — lane-dense working slab (scratch)

        # Hoist the 8 scalar loads (only 2 scalar slots per bundle; keep the
        # VPU/XLU chain dense).
        w00 = p_ref[0]; w01 = p_ref[1]; w02 = p_ref[2]; b0 = p_ref[3]
        w10 = p_ref[4]; w11 = p_ref[5]; w12 = p_ref[6]; b1 = p_ref[7]

        # Build the zero-padded, lane-dense slab in VMEM
        # (one vector zero + one masked store).
        slab_ref[...] = jnp.zeros_like(slab_ref)
        slab_ref[:rows, :l0] = x_ref[...]
        x = slab_ref[...]

        # conv_t0 as a 3-tap stencil: y[j] = sum_k w0[k] * x[j-k] + b0
        # (wrap-around lanes brought in by roll are zero-padded, so harmless).
        x1 = pltpu.roll(x, 1, 1)
        x2 = pltpu.roll(x, 2, 1)
        y = w00 * x + w01 * x1 + w02 * x2 + b0

        # torch.where(y > 0, y, 0.7 * y); then zero lanes past the valid
        # conv_t0 output so the broadcast bias cannot leak into conv_t1 and
        # the lanes wrapped around by the next rolls stay exactly zero.
        t = jnp.where(y > 0, y, LEAK * y)
        lane = jax.lax.broadcasted_iota(jnp.int32, t.shape, 1)
        t = jnp.where(lane < l1, t, 0.0)

        # conv_t1 (+ center-aligned residual folded into its middle tap) + b1.
        t1 = pltpu.roll(t, 1, 1)
        t2 = pltpu.roll(t, 2, 1)
        slab_ref[...] = w10 * t + w11 * t1 + w12 * t2 + b1

        # Emit only the valid (rows, l2) window — natural-shape output,
        # no host-side slice/reshape needed afterwards.
        o_ref[...] = slab_ref[:rows, :l2]

    return kernel


def pack_params(w0, b0, w1, b1):
    """One-time packing of the 6 conv taps + 2 biases into a flat (8,) f32
    vector; the identity residual is folded into conv_t1's middle tap."""
    w0f = jnp.asarray(w0, jnp.float32).reshape(K)
    w1f = jnp.asarray(w1, jnp.float32).reshape(K).at[1].add(1.0)
    return jnp.concatenate([
        w0f, jnp.reshape(jnp.asarray(b0, jnp.float32), (1,)),
        w1f, jnp.reshape(jnp.asarray(b1, jnp.float32), (1,)),
    ])


@jax.jit
def model_forward(x_ncl, params):
    n, c, l0 = x_ncl.shape
    assert c == 1, "module has a single input / output channel"
    l1 = l0 + K - 1          # conv_t0 output length
    l2 = l1 + K - 1          # conv_t1 output length
    assert l2 <= LANES, "single-block kernel: signal must fit in 128 lanes"

    rows = n * c
    r_pad = ((rows + SUBLANES - 1) // SUBLANES) * SUBLANES

    x2d = x_ncl.reshape(rows, l0).astype(jnp.float32)   # metadata-only reshape

    out = pl.pallas_call(
        _make_kernel(rows, l0, l1, l2),
        out_shape=jax.ShapeDtypeStruct((rows, l2), jnp.float32),
        in_specs=[
            pl.BlockSpec(memory_space=pltpu.MemorySpace.VMEM),   # x (full block)
            pl.BlockSpec(memory_space=pltpu.MemorySpace.SMEM),   # taps + biases
        ],
        out_specs=pl.BlockSpec(memory_space=pltpu.MemorySpace.VMEM),
        scratch_shapes=[pltpu.VMEM((r_pad, LANES), jnp.float32)],
    )(x2d, params)

    return out.reshape(n, c, l2)


def _convt_ref(x, w, b):
    """NumPy reference for ConvTranspose1d(1,1,3,stride=1) on a 1-D signal."""
    l = x.shape[0]
    o = np.zeros(l + K - 1, dtype=np.float32)
    for i in range(l):
        for k in range(K):
            o[i + k] += x[i] * w[k]
    return o + b


if __name__ == "__main__":
    key = jax.random.PRNGKey(0)
    kx, kw0, kb0, kw1, kb1 = jax.random.split(key, 5)

    # deterministic inputs / parameters (shapes per ConvTranspose1d(1,1,3))
    x = jax.random.normal(kx, (1, 1, 3), dtype=jnp.float32)
    w0 = jax.random.normal(kw0, (3,), dtype=jnp.float32) * 0.5   # weight (1,1,3) squeezed
    b0 = jax.random.normal(kb0, (), dtype=jnp.float32) * 0.1     # bias (1,)
    w1 = jax.random.normal(kw1, (3,), dtype=jnp.float32) * 0.5
    b1 = jax.random.normal(kb1, (), dtype=jnp.float32) * 0.1

    params = pack_params(w0, b0, w1, b1)        # hoisted: once per weight set
    out = jax.block_until_ready(model_forward(x, params))

    # sanity check against a plain NumPy reference
    xr = np.asarray(x, dtype=np.float32).reshape(3)
    y = _convt_ref(xr, np.asarray(w0), float(b0))
    t = np.where(y > 0, y, LEAK * y).astype(np.float32)
    ref = _convt_ref(t, np.asarray(w1), float(b1))
    ref[1:1 + t.shape[0]] += t                  # center-aligned residual

    assert out.shape == (1, 1, 7), out.shape
    assert np.allclose(np.asarray(out).reshape(-1), ref, atol=1e-5, rtol=1e-5)
    print("KERNEL_OK")
</pallas_src>

<mosaic_0001>
module attributes {stable_mosaic.version = 11 : i64} {
  func.func @kernel(%arg0: memref<1x3xf32, #tpu.memory_space<vmem>>, %arg1: memref<8xf32, #tpu.memory_space<smem>>, %arg2: memref<1x7xf32, #tpu.memory_space<vmem>>, %arg3: memref<8x128xf32, #tpu.memory_space<vmem>>) attributes {dimension_semantics = [], scalar_prefetch = 0 : i64, scratch_operands = 1 : i64, tpu.core_type = #tpu.core_type<tc>} {
    %c0 = arith.constant 0 : index
    %0 = memref.load %arg1[%c0] : memref<8xf32, #tpu.memory_space<smem>>
    %c1 = arith.constant 1 : index
    %1 = memref.load %arg1[%c1] : memref<8xf32, #tpu.memory_space<smem>>
    %c2 = arith.constant 2 : index
    %2 = memref.load %arg1[%c2] : memref<8xf32, #tpu.memory_space<smem>>
    %c3 = arith.constant 3 : index
    %3 = memref.load %arg1[%c3] : memref<8xf32, #tpu.memory_space<smem>>
    %c4 = arith.constant 4 : index
    %4 = memref.load %arg1[%c4] : memref<8xf32, #tpu.memory_space<smem>>
    %c5 = arith.constant 5 : index
    %5 = memref.load %arg1[%c5] : memref<8xf32, #tpu.memory_space<smem>>
    %c6 = arith.constant 6 : index
    %6 = memref.load %arg1[%c6] : memref<8xf32, #tpu.memory_space<smem>>
    %c7 = arith.constant 7 : index
    %7 = memref.load %arg1[%c7] : memref<8xf32, #tpu.memory_space<smem>>
    %cst = arith.constant 0.000000e+00 : f32
    %8 = vector.broadcast %cst : f32 to vector<8x128xf32>
    %c0_0 = arith.constant 0 : index
    %c0_1 = arith.constant 0 : index
    %9 = vector.load %arg3[%c0_0, %c0_1] : memref<8x128xf32, #tpu.memory_space<vmem>>, vector<8x128xf32>
    tpu.vector_store %arg3[%c0_0, %c0_1], %8 {strides = array<i32>} : memref<8x128xf32, #tpu.memory_space<vmem>>, vector<8x128xf32>,
    %c0_2 = arith.constant 0 : index
    %c0_3 = arith.constant 0 : index
    %10 = vector.load %arg0[%c0_2, %c0_3] : memref<1x3xf32, #tpu.memory_space<vmem>>, vector<1x3xf32>
    %c0_4 = arith.constant 0 : index
    %c0_5 = arith.constant 0 : index
    %11 = vector.load %arg3[%c0_4, %c0_5] : memref<8x128xf32, #tpu.memory_space<vmem>>, vector<1x3xf32>
    tpu.vector_store %arg3[%c0_4, %c0_5], %10 {strides = array<i32>} : memref<8x128xf32, #tpu.memory_space<vmem>>, vector<1x3xf32>,
    %c0_6 = arith.constant 0 : index
    %c0_7 = arith.constant 0 : index
    %12 = vector.load %arg3[%c0_6, %c0_7] : memref<8x128xf32, #tpu.memory_space<vmem>>, vector<8x128xf32>
    %c1_i32 = arith.constant 1 : i32
    %13 = tpu.dynamic_rotate %12 by %c1_i32 dim 1 : vector<8x128xf32>, i32 -> vector<8x128xf32>
    %c2_i32 = arith.constant 2 : i32
    %14 = tpu.dynamic_rotate %12 by %c2_i32 dim 1 : vector<8x128xf32>, i32 -> vector<8x128xf32>
    %15 = vector.broadcast %0 : f32 to vector<8x128xf32>
    %16 = arith.mulf %15, %12 : vector<8x128xf32>
    %17 = vector.broadcast %1 : f32 to vector<8x128xf32>
    %18 = arith.mulf %17, %13 : vector<8x128xf32>
    %19 = arith.addf %16, %18 : vector<8x128xf32>
    %20 = vector.broadcast %2 : f32 to vector<8x128xf32>
    %21 = arith.mulf %20, %14 : vector<8x128xf32>
    %22 = arith.addf %19, %21 : vector<8x128xf32>
    %23 = vector.broadcast %3 : f32 to vector<8x128xf32>
    %24 = arith.addf %22, %23 : vector<8x128xf32>
    %cst_8 = arith.constant 0.000000e+00 : f32
    %25 = vector.broadcast %cst_8 : f32 to vector<8x128xf32>
    %26 = arith.cmpf ogt, %24, %25 : vector<8x128xf32>
    %cst_9 = arith.constant 0.699999988 : f32
    %27 = vector.broadcast %cst_9 : f32 to vector<8x128xf32>
    %28 = arith.mulf %27, %24 : vector<8x128xf32>
    %29 = arith.select %26, %24, %28 : vector<8x128xi1>, vector<8x128xf32>
    %30 = tpu.iota {dimensions = array<i32: 1>} : vector<8x128xi32>
    %c5_i32 = arith.constant 5 : i32
    %31 = vector.broadcast %c5_i32 : i32 to vector<8x128xi32>
    %32 = arith.cmpi slt, %30, %31 : vector<8x128xi32>
    %cst_10 = arith.constant 0.000000e+00 : f32
    %33 = vector.broadcast %cst_10 : f32 to vector<8x128xf32>
    %34 = arith.select %32, %29, %33 : vector<8x128xi1>, vector<8x128xf32>
    %c1_i32_11 = arith.constant 1 : i32
    %35 = tpu.dynamic_rotate %34 by %c1_i32_11 dim 1 : vector<8x128xf32>, i32 -> vector<8x128xf32>
    %c2_i32_12 = arith.constant 2 : i32
    %36 = tpu.dynamic_rotate %34 by %c2_i32_12 dim 1 : vector<8x128xf32>, i32 -> vector<8x128xf32>
    %37 = vector.broadcast %4 : f32 to vector<8x128xf32>
    %38 = arith.mulf %37, %34 : vector<8x128xf32>
    %39 = vector.broadcast %5 : f32 to vector<8x128xf32>
    %40 = arith.mulf %39, %35 : vector<8x128xf32>
    %41 = arith.addf %38, %40 : vector<8x128xf32>
    %42 = vector.broadcast %6 : f32 to vector<8x128xf32>
    %43 = arith.mulf %42, %36 : vector<8x128xf32>
    %44 = arith.addf %41, %43 : vector<8x128xf32>
    %45 = vector.broadcast %7 : f32 to vector<8x128xf32>
    %46 = arith.addf %44, %45 : vector<8x128xf32>
    %c0_13 = arith.constant 0 : index
    %c0_14 = arith.constant 0 : index
    %47 = vector.load %arg3[%c0_13, %c0_14] : memref<8x128xf32, #tpu.memory_space<vmem>>, vector<8x128xf32>
    tpu.vector_store %arg3[%c0_13, %c0_14], %46 {strides = array<i32>} : memref<8x128xf32, #tpu.memory_space<vmem>>, vector<8x128xf32>,
    %c0_15 = arith.constant 0 : index
    %c0_16 = arith.constant 0 : index
    %48 = vector.load %arg3[%c0_15, %c0_16] : memref<8x128xf32, #tpu.memory_space<vmem>>, vector<1x7xf32>
    %c0_17 = arith.constant 0 : index
    %c0_18 = arith.constant 0 : index
    %49 = vector.load %arg2[%c0_17, %c0_18] : memref<1x7xf32, #tpu.memory_space<vmem>>, vector<1x7xf32>
    tpu.vector_store %arg2[%c0_17, %c0_18], %48 {strides = array<i32>} : memref<1x7xf32, #tpu.memory_space<vmem>>, vector<1x7xf32>,
    return
  }
}

</mosaic_0001>

<bundles_post_ra>
// kernel: model_forward.1
= control target key start
LH: loop header
LB: loop body
LE: loop exit
PB: predicated region body
PF: predicated region fallthrough
CT: control target
= control target key end

     0   :  { %7 = vsyncpa [#allocation4], 0  ;;  %s218_s0 = inlined_call_operand.hbm [shape: f32[1,3], index: 0, kind: input, shape index: {}]   ;;  %s219_s1 = inlined_call_operand.vmem [shape: f32[8], index: 1, kind: input, shape index: {}]   ;;  %s220_s2 = inlined_call_operand.hbm [shape: f32[1,7], index: 2, kind: output, shape index: {}]  }
   0x1   :  { %8 = vsyncpa [#allocation6], 0 }
   0x2   :  { %9 = vsyncpa [#allocation5], 0  ;;  %s15_s11 = sshll.u32 %s218_s0, 4  ;;  %s188_s12 = smov [#allocation3]   ;;  %s16_s11 = int_to_ptr.hbm [resolvable:$true] %s15_s11 }
   0x3   :  { %s17_s13 = sshll.u32 %s188_s12, 4  ;;  %s26_s16 = sshll.u32 %s219_s1, 4  ;;  %s18_s13 = int_to_ptr.vmem [resolvable:$true] %s17_s13  ;;  %s27_s16 = int_to_ptr.vmem [resolvable:$true] %s26_s16 }
   0x4   :  { %20 = dma.hbm_to_vmem [thread:$0]  %s16_s11, 16, %s18_s13, [#allocation4]  }
   0x5   :  { %s189_s17 = smov [#allocation7]  }
   0x6   :  { %29 = dma.vmem_to_smem %s27_s16, 16, %s189_s17, [#allocation6]  }
   0x7   :  { %182 = dma.done.wait [#allocation4], 16  }
   0x8   :  { %183 = vsyncadd [#allocation4], 4294967280 }
   0x9   :  { %184 = dma.done.wait [#allocation6], 16  }
   0xa   :  { %185 = vsyncadd [#allocation6], 4294967280 }
   0xb   :  { %38 = sfence }
   0xc   :  { %v48_v0 = vld [vmem:[#allocation3] sm:$0x1]  ;;  %vm49_vm0 = vcmask 16384   ;;  %v190_v1 = vmov 0.0   ;;  %s191_s0 = smov 1   ;;  %s192_s18 = smov 2   ;;  %v69_v9 = vlaneseq }
   0xd   :  { %47 = vst [vmem:[#allocation2] sm:$0xff] %v190_v1  ;;  %s39_s1 = sld [smem:[#allocation7]]  ;;  %s193_s26 = smov [#allocation8]   ;;  %vm89_vm3 = vcmask 49152  }
   0xe   :  { %50 = vst.msk [vmem:[#allocation2] sm:$0x1] %vm49_vm0, %v48_v0  ;;  %s109_s19 = sld [smem:[#allocation7 + $0x1]]  ;;  %v70_v15 = vand.u32 127, %v69_v9  ;;  %s96_s27 = sshll.u32 %s193_s26, 4  ;;  %s97_s27 = int_to_ptr.vmem [resolvable:$true] %s96_s27 }
   0xf   :  { %s110_s20 = sld [smem:[#allocation7 + $0x2]]  ;;  %s98_s30 = sshll.u32 %s220_s2, 4  ;;  %s99_s30 = int_to_ptr.hbm [resolvable:$true] %s98_s30 }
  0x10   :  { %s111_s21 = sld [smem:[#allocation7 + $0x3]]  ;;  %vm71_vm2 = vcmp.lt.s32.totalorder %v70_v15, 5 }
  0x11   :  { %s113_s22 = sld [smem:[#allocation7 + $0x5]] }
  0x12   :  { %s112_s23 = sld [smem:[#allocation7 + $0x4]] }
  0x13   :  { %v56_v4 = vstv %s39_s1  ;;  %s114_s24 = sld [smem:[#allocation7 + $0x6]] }
  0x14   :  { %v58_v5 = vstv %s109_s19  ;;  %s115_s25 = sld [smem:[#allocation7 + $0x7]] }
  0x15   :  { %v51_v2 = vld [vmem:[#allocation2] sm:$0xff]  ;;  %v61_v8 = vstv %s110_s20 }
  0x16   :  { %52 = vrot.lane.b32.xlu0 %v51_v2, %s191_s0  ;;  %v57_v6 = vmul.f32 %v56_v4, %v51_v2  ;;  %v64_v13 = vstv %s111_s21 }
  0x17   :  { %v79_v21 = vstv %s113_s22 }
  0x18   :  { %v77_v22 = vstv %s112_s23 }
  0x19   :  { %v82_v24 = vstv %s114_s24 }
  0x1a   :  { %v85_v29 = vstv %s115_s25 }
  0x1e   :  { %54 = vrot.lane.b32.xlu0 %v51_v2, %s192_s18 }
  0x88   :  { %v53_v3 = vpop.permute.xlu0 %52 }
  0x89   :  { %v59_v7 = vmul.f32 %v58_v5, %v53_v3 }
  0x8b   :  { %v60_v11 = vadd.f32 %v59_v7, %v57_v6 }
  0x90   :  { %v55_v10 = vpop.permute.xlu0 %54 }
  0x91   :  { %v62_v12 = vmul.f32 %v61_v8, %v55_v10 }
  0x93   :  { %v63_v14 = vadd.f32 %v62_v12, %v60_v11 }
  0x95   :  { %v65_v16 = vadd.f32 %v64_v13, %v63_v14 }
  0x97   :  { %vm66_vm1 = vcmp.gt.f32.partialorder %v65_v16, 0.0  ;;  %v67_v17 = vmul.f32 0.7, %v65_v16 }
  0x99   :  { %v68_v18 = vsel %vm66_vm1, %v65_v16, %v67_v17 }
  0x9a   :  { %v72_v19 = vsel %vm71_vm2, %v68_v18, 0.0 }
  0x9b   :  { %73 = vrot.lane.b32.xlu1 %v72_v19, %s191_s0  ;;  %v78_v25 = vmul.f32 %v77_v22, %v72_v19 }
  0xa3   :  { %75 = vrot.lane.b32.xlu1 %v72_v19, %s192_s18 }
 0x10d   :  { %v74_v20 = vpop.permute.xlu1 %73 }
 0x10e   :  { %v80_v23 = vmul.f32 %v79_v21, %v74_v20 }
 0x110   :  { %v81_v27 = vadd.f32 %v80_v23, %v78_v25 }
 0x115   :  { %v76_v26 = vpop.permute.xlu1 %75 }
 0x116   :  { %v83_v28 = vmul.f32 %v82_v24, %v76_v26 }
 0x118   :  { %v84_v30 = vadd.f32 %v83_v28, %v81_v27 }
 0x11a   :  { %v86_v31 = vadd.f32 %v85_v29, %v84_v30 }
 0x11c   :  { %87 = vst [vmem:[#allocation2] sm:$0xff] %v86_v31 }
 0x123   :  { %v88_v32 = vld [vmem:[#allocation2] sm:$0x1] }
 0x124   :  { %90 = vst.msk [vmem:[#allocation8] sm:$0x1] %vm89_vm3, %v88_v32 }
 0x125   :  { %101 = dma.vmem_to_hbm [thread:$0]  %s97_s27, 16, %s99_s30, [#allocation5]  }
 0x126   :  { %186 = dma.done.wait [#allocation5], 16  }
 0x127   :  { %187 = vsyncadd [#allocation5], 4294967280 }
 0x128   :  { %106 = vsyncpa [#allocation4], 1 }
 0x129   :  { %107 = vsyncpa [#allocation5], 1 }
 0x12a   :  { %108 = vsyncpa [#allocation6], 1 }

</bundles_post_ra>
